<compile_context>
chip_gen: v7x
topology: tpu7x:2x2x1
jax: 0.10.0
libtpu: 0.0.40
codegen_flags: <defaults>
</compile_context>

<pallas_src>
import functools

import jax
import jax.numpy as jnp
from jax.experimental import pallas as pl
from jax.experimental.pallas import tpu as pltpu

_LANES = 128
_SUBLANES = 8


def _round_up(a, b):
    return -(-a // b) * b


def _min_value(dtype):
    if jnp.issubdtype(dtype, jnp.floating):
        return float("-inf")
    return int(jnp.iinfo(dtype).min)


def _global_max_pool1d_kernel(
    x_ref, o_ref, acc_ref, *, n_lane_chunks, len_tile, true_len, min_val, mask_tail
):
    """x_ref: (TR, TL) tile, o_ref: (TR, 1), acc_ref: (TR, 128) running max."""
    l = pl.program_id(1)
    n_l = pl.num_programs(1)

    @pl.when(l == 0)
    def _init():
        acc_ref[...] = jnp.full(acc_ref.shape, min_val, acc_ref.dtype)

    def fold(masked):
        m = acc_ref[...]
        if masked:
            # Hoisted out of the chunk loop (JAX does not CSE broadcasts).
            lane = jax.lax.broadcasted_iota(jnp.int32, acc_ref.shape, 1)
            fill = jnp.asarray(min_val, dtype=acc_ref.dtype)
            valid = true_len - l * len_tile  # valid lanes in this L tile
        for j in range(n_lane_chunks):
            chunk = x_ref[:, j * _LANES:(j + 1) * _LANES]
            if masked:
                chunk = jnp.where(lane < (valid - j * _LANES), chunk, fill)
            m = jnp.maximum(m, chunk)  # pure VPU, no cross-lane work
        acc_ref[...] = m

    if mask_tail:
        # Only the final L tile can contain out-of-range (stale) lanes.
        @pl.when(l == n_l - 1)
        def _tail():
            fold(True)

        @pl.when(l < n_l - 1)
        def _body():
            fold(False)
    else:
        fold(False)

    @pl.when(l == n_l - 1)
    def _finalize():
        # Single cross-lane (XLU) reduce per row tile; output traffic is a
        # negligible 1/L fraction of input traffic.
        o_ref[...] = jnp.max(acc_ref[...], axis=-1, keepdims=True).astype(o_ref.dtype)


def global_max_pool1d(x, *, row_tile=256, len_tile=8192):
    """x: (N, C, L) -> (N, C, 1), max over the length axis."""
    N, C, L = x.shape
    R = N * C
    dtype = x.dtype
    min_val = _min_value(dtype)

    xf = x.reshape(R, L)

    # Normalize requested tile sizes to hardware tiling.
    row_tile = _round_up(max(row_tile, _SUBLANES), _SUBLANES)
    len_tile = _round_up(max(len_tile, _LANES), _LANES)

    # Row tile: clamp to the problem size; if that would leave a single row
    # tile but there are at least 2 sublane groups, split it so v7x's two
    # TensorCores both get work on the "parallel" rows axis.
    r8 = _round_up(R, _SUBLANES)
    tr = min(row_tile, r8)
    if pl.cdiv(r8, tr) < 2 and r8 >= 2 * _SUBLANES:
        tr = _round_up(pl.cdiv(r8, 2), _SUBLANES)

    # Length tile: clamp to the (lane-rounded) length; no wrapper-side padding.
    tl = min(len_tile, _round_up(L, _LANES))

    grid = (pl.cdiv(R, tr), pl.cdiv(L, tl))
    n_lane_chunks = tl // _LANES
    mask_tail = (L % tl) != 0

    # VMEM budget: double-buffered input tile + accumulator + output block.
    # >= 32 MiB covers v5e's 16 MiB scoped default; stays within the v7x
    # (64 MiB physical) headroom for the default tile sizes.
    itemsize = jnp.dtype(dtype).itemsize
    vmem_needed = 2 * tr * tl * itemsize + tr * _LANES * itemsize + 2 * tr * itemsize
    vmem_limit = max(32 * 1024 * 1024, int(1.25 * vmem_needed))

    kernel = functools.partial(
        _global_max_pool1d_kernel,
        n_lane_chunks=n_lane_chunks,
        len_tile=tl,
        true_len=L,
        min_val=min_val,
        mask_tail=mask_tail,
    )

    out = pl.pallas_call(
        kernel,
        out_shape=jax.ShapeDtypeStruct((R, 1), dtype),
        grid=grid,
        in_specs=[pl.BlockSpec((tr, tl), lambda r, l: (r, l))],
        out_specs=pl.BlockSpec((tr, 1), lambda r, l: (r, 0)),
        scratch_shapes=[pltpu.VMEM((tr, _LANES), dtype)],
        compiler_params=pltpu.CompilerParams(
            dimension_semantics=("parallel", "arbitrary"),
            vmem_limit_bytes=vmem_limit,
        ),
    )(xf)

    return out.reshape(N, C, 1)


if __name__ == "__main__":
    key = jax.random.PRNGKey(0)

    # Small shape consistent with the module's forward: (batch, channels, length).
    N, C, L = 2, 4, 16
    x = jax.random.normal(key, (N, C, L), dtype=jnp.float32)

    out = global_max_pool1d(x)
    out = jax.block_until_ready(out)

    ref = jnp.max(x, axis=2, keepdims=True)
    assert out.shape == (N, C, 1), out.shape
    assert jnp.allclose(out, ref), "mismatch vs reference"

    # Multi-step L reduction with an in-kernel masked tail (300 = 2*128 + 44).
    x2 = jax.random.normal(jax.random.PRNGKey(1), (2, 4, 300), dtype=jnp.float32)
    out2 = jax.block_until_ready(global_max_pool1d(x2, row_tile=8, len_tile=128))
    ref2 = jnp.max(x2, axis=2, keepdims=True)
    assert out2.shape == (2, 4, 1), out2.shape
    assert jnp.allclose(out2, ref2), "mismatch vs reference (tiled L)"

    # Row overhang (300 rows, tile 256), 2 parallel row tiles, masked L tail.
    x3 = jax.random.normal(jax.random.PRNGKey(2), (3, 100, 1000), dtype=jnp.float32)
    out3 = jax.block_until_ready(global_max_pool1d(x3))
    ref3 = jnp.max(x3, axis=2, keepdims=True)
    assert out3.shape == (3, 100, 1), out3.shape
    assert jnp.allclose(out3, ref3), "mismatch vs reference (row overhang)"

    print("KERNEL_OK")
</pallas_src>

<mosaic_0001>
module attributes {stable_mosaic.version = 11 : i64} {
  func.func @_global_max_pool1d_kernel(%arg0: i32, %arg1: i32, %arg2: memref<8x128xf32, #tpu.memory_space<vmem>>, %arg3: memref<8x1xf32, #tpu.memory_space<vmem>>, %arg4: memref<8x128xf32, #tpu.memory_space<vmem>>) attributes {dimension_semantics = [#tpu.dimension_semantics<parallel>, #tpu.dimension_semantics<arbitrary>], iteration_bounds = array<i64: 1, 1>, scalar_prefetch = 0 : i64, scratch_operands = 1 : i64, tpu.core_type = #tpu.core_type<tc>, window_params = [{transform_indices = @transform_0, window_bounds = array<i64: 8, 128>}, {transform_indices = @transform_1, window_bounds = array<i64: 8, 1>}]} {
    %c0_i32 = arith.constant 0 : i32
    %0 = arith.cmpi eq, %arg1, %c0_i32 : i32
    %1 = arith.extui %0 : i1 to i32
    %c0_i32_0 = arith.constant 0 : i32
    %2 = arith.cmpi ne, %1, %c0_i32_0 : i32
    scf.if %2 {
      %cst = arith.constant 0xFF800000 : f32
      %12 = vector.broadcast %cst : f32 to vector<8x128xf32>
      %c0 = arith.constant 0 : index
      %c0_7 = arith.constant 0 : index
      %13 = vector.load %arg4[%c0, %c0_7] : memref<8x128xf32, #tpu.memory_space<vmem>>, vector<8x128xf32>
      tpu.vector_store %arg4[%c0, %c0_7], %12 {strides = array<i32>} : memref<8x128xf32, #tpu.memory_space<vmem>>, vector<8x128xf32>,
    } else {
    }
    %c0_i32_1 = arith.constant 0 : i32
    %3 = arith.cmpi eq, %arg1, %c0_i32_1 : i32
    %4 = arith.extui %3 : i1 to i32
    %c0_i32_2 = arith.constant 0 : i32
    %5 = arith.cmpi ne, %4, %c0_i32_2 : i32
    scf.if %5 {
      %c0 = arith.constant 0 : index
      %c0_7 = arith.constant 0 : index
      %12 = vector.load %arg4[%c0, %c0_7] : memref<8x128xf32, #tpu.memory_space<vmem>>, vector<8x128xf32>
      %13 = tpu.iota {dimensions = array<i32: 1>} : vector<8x128xi32>
      %c128_i32 = arith.constant 128 : i32
      %14 = arith.muli %arg1, %c128_i32 : i32
      %c16_i32 = arith.constant 16 : i32
      %15 = arith.subi %c16_i32, %14 : i32
      %c0_8 = arith.constant 0 : index
      %c0_9 = arith.constant 0 : index
      %16 = vector.load %arg2[%c0_8, %c0_9] : memref<8x128xf32, #tpu.memory_space<vmem>>, vector<8x128xf32>
      %c0_i32_10 = arith.constant 0 : i32
      %17 = arith.subi %15, %c0_i32_10 : i32
      %18 = vector.broadcast %17 : i32 to vector<8x128xi32>
      %19 = arith.cmpi slt, %13, %18 : vector<8x128xi32>
      %cst = arith.constant 0xFF800000 : f32
      %20 = vector.broadcast %cst : f32 to vector<8x128xf32>
      %21 = arith.select %19, %16, %20 : vector<8x128xi1>, vector<8x128xf32>
      %22 = arith.maximumf %12, %21 : vector<8x128xf32>
      %c0_11 = arith.constant 0 : index
      %c0_12 = arith.constant 0 : index
      %23 = vector.load %arg4[%c0_11, %c0_12] : memref<8x128xf32, #tpu.memory_space<vmem>>, vector<8x128xf32>
      tpu.vector_store %arg4[%c0_11, %c0_12], %22 {strides = array<i32>} : memref<8x128xf32, #tpu.memory_space<vmem>>, vector<8x128xf32>,
    } else {
    }
    %c0_i32_3 = arith.constant 0 : i32
    %6 = arith.cmpi slt, %arg1, %c0_i32_3 : i32
    %7 = arith.extui %6 : i1 to i32
    %c0_i32_4 = arith.constant 0 : i32
    %8 = arith.cmpi ne, %7, %c0_i32_4 : i32
    scf.if %8 {
      %c0 = arith.constant 0 : index
      %c0_7 = arith.constant 0 : index
      %12 = vector.load %arg4[%c0, %c0_7] : memref<8x128xf32, #tpu.memory_space<vmem>>, vector<8x128xf32>
      %c0_8 = arith.constant 0 : index
      %c0_9 = arith.constant 0 : index
      %13 = vector.load %arg2[%c0_8, %c0_9] : memref<8x128xf32, #tpu.memory_space<vmem>>, vector<8x128xf32>
      %14 = arith.maximumf %12, %13 : vector<8x128xf32>
      %c0_10 = arith.constant 0 : index
      %c0_11 = arith.constant 0 : index
      %15 = vector.load %arg4[%c0_10, %c0_11] : memref<8x128xf32, #tpu.memory_space<vmem>>, vector<8x128xf32>
      tpu.vector_store %arg4[%c0_10, %c0_11], %14 {strides = array<i32>} : memref<8x128xf32, #tpu.memory_space<vmem>>, vector<8x128xf32>,
    } else {
    }
    %c0_i32_5 = arith.constant 0 : i32
    %9 = arith.cmpi eq, %arg1, %c0_i32_5 : i32
    %10 = arith.extui %9 : i1 to i32
    %c0_i32_6 = arith.constant 0 : i32
    %11 = arith.cmpi ne, %10, %c0_i32_6 : i32
    scf.if %11 {
      %c0 = arith.constant 0 : index
      %c0_7 = arith.constant 0 : index
      %12 = vector.load %arg4[%c0, %c0_7] : memref<8x128xf32, #tpu.memory_space<vmem>>, vector<8x128xf32>
      %cst = arith.constant dense<0xFF800000> : vector<8xf32>
      %13 = vector.multi_reduction <maximumf>, %12, %cst [1] : vector<8x128xf32> to vector<8xf32>
      %14 = vector.shape_cast %13 : vector<8xf32> to vector<8x1xf32>
      %c0_8 = arith.constant 0 : index
      %c0_9 = arith.constant 0 : index
      %15 = vector.load %arg3[%c0_8, %c0_9] : memref<8x1xf32, #tpu.memory_space<vmem>>, vector<8x1xf32>
      tpu.vector_store %arg3[%c0_8, %c0_9], %14 {strides = array<i32>} : memref<8x1xf32, #tpu.memory_space<vmem>>, vector<8x1xf32>,
    } else {
    }
    return
  }
  func.func @transform_0(%arg0: i32, %arg1: i32) -> (i32, i32) {
    %c0_i32 = arith.constant 0 : i32
    return %arg0, %arg1 : i32, i32
  }
  func.func @transform_1(%arg0: i32, %arg1: i32) -> (i32, i32) {
    %c0_i32 = arith.constant 0 : i32
    %c0_i32_0 = arith.constant 0 : i32
    return %arg0, %c0_i32 : i32, i32
  }
}

</mosaic_0001>

<bundles_post_ra>
// kernel: tpu_custom_call.1
= control target key start
LH: loop header
LB: loop body
LE: loop exit
PB: predicated region body
PF: predicated region fallthrough
CT: control target
= control target key end

     0   :  { %6 = vsyncpa [#allocation4], 0  ;;  %s82_s6 = smov [#allocation3]   ;;  %s108_s0 = inlined_call_operand.hbm [shape: f32[8,16], index: 0, kind: input, shape index: {}]   ;;  %s109_s1 = inlined_call_operand.vmem [shape: f32[8,1], index: 1, kind: output, shape index: {}]  }
   0x1   :  { %s13_s7 = sshll.u32 %s82_s6, 4  ;;  %s58_s10 = scalar_lea.hbm %s108_s0, 128  ;;  %s14_s7 = int_to_ptr.vmem [resolvable:$true] %s13_s7 }
   0x2   :  { %p59_p0 = scmp.ne.s32.totalorder %s108_s0, %s58_s10  ;;  %p62_p1 = scmp.lt.u32.totalorder %s58_s10, %s108_s0 }
   0x4   :  { %p64_p2 = pnand %p62_p1, %p59_p0 }
   0x6   :  { %67 = shalt.err (!%p64_p2)
}
   0x7   :  { %s68_s15 = scalar_lea.vmem %s14_s7, 128  ;;  %p73_p4 = scmp.lt.s32.totalorder %s14_s7, %s14_s7 }
   0x8   :  { %p69_p3 = scmp.ne.s32.totalorder %s14_s7, %s68_s15  ;;  %p74_p5 = scmp.lt.s32.totalorder %s68_s15, %s68_s15 }
   0xa   :  { %p75_p6 = por %p74_p5, %p73_p4 }
   0xc   :  { %p76_p7 = pnand %p75_p6, %p69_p3 }
   0xe   :  { %79 = shalt.err (!%p76_p7)
}
   0xf   :  { %16 = dma.hbm_to_vmem [thread:$0]  %s108_s0, 128, %s14_s7, [#allocation4]  }
  0x10   :  { %80 = dma.done.wait [#allocation4], 128  }
  0x11   :  { %81 = vsyncadd [#allocation4], 4294967168  ;;  %v26_v0 = vlaneseq  ;;  %v30_v2 = vld [vmem:[#allocation3] sm:$0xff]  ;;  %vm50_vm1 = vcmask 7168  }
  0x13   :  { %v27_v1 = vand.u32 127, %v26_v0 }
  0x15   :  { %vm32_vm0 = vcmp.lt.s32.totalorder %v27_v1, 16 }
  0x16   :  { %v33_v3 = vsel %vm32_vm0, %v30_v2, -inf }
  0x17   :  { %48 = vmax.xlane.f32.xlu0 %v33_v3 }
  0xa4   :  { %v49_v4 = vpop.xlane.xlu0 %48 }
  0xa5   :  { %51 = vst.msk [vmem:[%s109_s1] sm:$0xff] %vm50_vm1, %v49_v4 }
  0xa6   :  { %56 = vsyncpa [#allocation4], 1 }

</bundles_post_ra>
